<compile_context>
chip_gen: v7x
topology: tpu7x:2x2x1
jax: 0.10.0
libtpu: 0.0.40
codegen_flags: <defaults>
</compile_context>

<pallas_src>
import functools
import math

import jax
import jax.numpy as jnp
from jax.experimental import pallas as pl
from jax.experimental.pallas import tpu as pltpu


def _scale_kernel(inv_ref, x_ref, o_ref):
    """o = x * inv_rate; multiply in f32, cast only the product."""
    inv = inv_ref[0]  # f32 scalar from SMEM
    o_ref[...] = (x_ref[...].astype(jnp.float32) * inv).astype(o_ref.dtype)


@functools.lru_cache(maxsize=None)
def _build_scale_call(rows, cols, tile_r, dtype):
    grid = (pl.cdiv(rows, tile_r),)
    return pl.pallas_call(
        _scale_kernel,
        out_shape=jax.ShapeDtypeStruct((rows, cols), dtype),
        grid_spec=pl.GridSpec(
            grid=grid,
            in_specs=[
                pl.BlockSpec(memory_space=pltpu.MemorySpace.SMEM),  # inv_rate
                pl.BlockSpec((tile_r, cols), lambda i: (i, 0)),     # x tile
            ],
            out_specs=pl.BlockSpec((tile_r, cols), lambda i: (i, 0)),
        ),
        compiler_params=pltpu.CompilerParams(
            # Pure elementwise: every grid step is independent, so let v7x
            # shard the axis across both TensorCores.
            dimension_semantics=("parallel",),
        ),
    )


def _choose_layout(shape, itemsize):
    """Pick a free contiguous-reshape 2-D layout and a ~1 MiB row tile."""
    n = int(math.prod(shape)) if len(shape) else 1
    cols = None
    for c in (512, 256, 128):           # lane-dense (multiple of 128) if possible
        if n % c == 0:
            cols = c
            break
    if cols is None:
        cols = shape[-1] if len(shape) else 1   # full last dim: always legal
    rows = n // cols
    sublane = max(8, 32 // max(1, itemsize))    # 8 f32 / 16 bf16 / 32 int8
    # ~1 MiB blocks: with in+out double-buffered that's ~4 MiB live VMEM,
    # comfortably inside every chip's scoped-VMEM default while still hitting
    # ~85% of HBM roofline for an elementwise op.
    target_rows = max(sublane, (1 << 20) // max(1, cols * itemsize))
    if rows <= target_rows:
        tile_r = rows                   # single block along rows (== full dim)
    else:
        tile_r = (target_rows // sublane) * sublane
    return rows, cols, tile_r


class Scaler:
    """JAX/Pallas port of the HeteroFL Scaler module."""

    def __init__(self, rate, scale, xla_fallback_elems=0):
        self.rate = float(rate) if scale else 1.0
        self.training = True  # matches nn.Module default
        # Below this element count skip Pallas and let a plain XLA multiply
        # fuse with neighbouring ops (kernel launch overhead dominates there).
        self.xla_fallback_elems = int(xla_fallback_elems)

    def __call__(self, x):
        # Eval mode (and rate == 1, i.e. scale=False) is the identity:
        # return x as-is -- no kernel, no HBM round trip, no copy.
        if (not self.training) or self.rate == 1.0:
            return x

        x = jnp.asarray(x)
        if x.size == 0:
            return x

        # PyTorch promotes int tensor / float scalar to float; mirror that.
        if jnp.issubdtype(x.dtype, jnp.inexact):
            out_dtype = x.dtype
        else:
            out_dtype = jnp.dtype(jnp.float32)
        inv = jnp.float32(1.0 / self.rate)

        if x.size <= self.xla_fallback_elems:
            # Tiny tensors: fused XLA multiply beats fixed kernel overhead.
            return (x.astype(jnp.float32) * inv).astype(out_dtype)

        rows, cols, tile_r = _choose_layout(x.shape, out_dtype.itemsize)
        flat2d = x.astype(out_dtype).reshape(rows, cols)  # free reshape, no pad
        call = _build_scale_call(rows, cols, tile_r, out_dtype)
        out2d = call(jnp.asarray([inv], dtype=jnp.float32), flat2d)
        return out2d.reshape(x.shape)


if __name__ == "__main__":
    key = jax.random.PRNGKey(0)
    # Small NCHW input consistent with how Scaler is used inside ResNet blocks.
    x = jax.random.normal(key, (2, 4, 16, 16), dtype=jnp.float32)

    rate = 0.5  # e.g. HeteroFL width rate
    scaler = Scaler(rate=rate, scale=True)

    # Training mode: y = x / rate (runs the Pallas kernel).
    scaler.training = True
    y_train = jax.block_until_ready(scaler(x))
    assert y_train.shape == x.shape and y_train.dtype == x.dtype
    assert jnp.allclose(y_train, x / rate, atol=1e-6, rtol=1e-6)

    # Eval mode: identity -- no kernel launched, x returned directly.
    scaler.training = False
    y_eval = scaler(x)
    assert y_eval is x

    # scale=False path: rate forced to 1 -> identity even in training.
    scaler2 = Scaler(rate=rate, scale=False)
    scaler2.training = True
    assert scaler2(x) is x

    # bf16 input, non-power-of-two rate: reciprocal applied in f32, only the
    # product is cast to bf16.
    xb = jax.random.normal(jax.random.PRNGKey(1), (2, 4, 16, 16),
                           dtype=jnp.bfloat16)
    s3 = Scaler(rate=0.75, scale=True)
    yb = jax.block_until_ready(s3(xb))
    ref_b = (xb.astype(jnp.float32) / 0.75).astype(jnp.bfloat16)
    assert yb.dtype == jnp.bfloat16
    assert jnp.allclose(yb.astype(jnp.float32), ref_b.astype(jnp.float32),
                        atol=1e-2, rtol=1e-2)

    # Larger activation: multi-block grid with a ragged last block
    # (rows=520, tile_r=512, grid=(2,)) to exercise pipelining + masking.
    xl = jax.random.normal(jax.random.PRNGKey(2), (2, 13, 40, 256),
                           dtype=jnp.float32)
    s4 = Scaler(rate=0.25, scale=True)
    yl = jax.block_until_ready(s4(xl))
    assert yl.shape == xl.shape
    assert jnp.allclose(yl, xl / 0.25, atol=1e-5, rtol=1e-5)

    print("KERNEL_OK")
</pallas_src>

<mosaic_0001>
module attributes {stable_mosaic.version = 11 : i64} {
  func.func @_scale_kernel(%arg0: i32, %arg1: memref<1xf32, #tpu.memory_space<smem>>, %arg2: memref<4x512xf32, #tpu.memory_space<vmem>>, %arg3: memref<4x512xf32, #tpu.memory_space<vmem>>) attributes {dimension_semantics = [#tpu.dimension_semantics<parallel>], iteration_bounds = array<i64: 1>, scalar_prefetch = 0 : i64, scratch_operands = 0 : i64, tpu.core_type = #tpu.core_type<tc>, window_params = [{transform_indices = @transform_0, window_bounds = array<i64: 1>}, {transform_indices = @transform_1, window_bounds = array<i64: 4, 512>}, {transform_indices = @transform_2, window_bounds = array<i64: 4, 512>}]} {
    %c0 = arith.constant 0 : index
    %0 = memref.load %arg1[%c0] : memref<1xf32, #tpu.memory_space<smem>>
    %c0_0 = arith.constant 0 : index
    %c0_1 = arith.constant 0 : index
    %1 = vector.load %arg2[%c0_0, %c0_1] : memref<4x512xf32, #tpu.memory_space<vmem>>, vector<4x512xf32>
    %2 = vector.broadcast %0 : f32 to vector<4x512xf32>
    %3 = arith.mulf %1, %2 : vector<4x512xf32>
    %c0_2 = arith.constant 0 : index
    %c0_3 = arith.constant 0 : index
    %4 = vector.load %arg3[%c0_2, %c0_3] : memref<4x512xf32, #tpu.memory_space<vmem>>, vector<4x512xf32>
    tpu.vector_store %arg3[%c0_2, %c0_3], %3 {strides = array<i32>} : memref<4x512xf32, #tpu.memory_space<vmem>>, vector<4x512xf32>,
    return
  }
  func.func @transform_0(%arg0: i32) -> i32 {
    %c0_i32 = arith.constant 0 : i32
    %c0_i32_0 = arith.constant 0 : i32
    return %c0_i32 : i32
  }
  func.func @transform_1(%arg0: i32) -> (i32, i32) {
    %c0_i32 = arith.constant 0 : i32
    %c0_i32_0 = arith.constant 0 : i32
    return %arg0, %c0_i32 : i32, i32
  }
  func.func @transform_2(%arg0: i32) -> (i32, i32) {
    %c0_i32 = arith.constant 0 : i32
    %c0_i32_0 = arith.constant 0 : i32
    return %arg0, %c0_i32 : i32, i32
  }
}

</mosaic_0001>

<bundles_post_ra>
// kernel: tpu_custom_call.1
= control target key start
LH: loop header
LB: loop body
LE: loop exit
PB: predicated region body
PF: predicated region fallthrough
CT: control target
= control target key end

     0   :  { %8 = vsyncpa [#allocation4], 0  ;;  %s142_s0 = inlined_call_operand.<no memory space> [shape: f32[1], index: 0, kind: input, shape index: {}]   ;;  %s143_s1 = inlined_call_operand.hbm [shape: f32[4,512], index: 1, kind: input, shape index: {}]   ;;  %s144_s2 = inlined_call_operand.hbm [shape: f32[4,512], index: 2, kind: output, shape index: {}]  }
   0x1   :  { %9 = vsyncpa [#allocation5], 0  ;;  %s98_s9 = smov [#allocation3]   ;;  %s50_s13 = scalar_lea.hbm %s143_s1, 256 }
   0x2   :  { %s18_s10 = sshll.u32 %s98_s9, 4  ;;  %p51_p0 = scmp.ne.s32.totalorder %s143_s1, %s50_s13  ;;  %s19_s10 = int_to_ptr.vmem [resolvable:$true] %s18_s10 }
   0x3   :  { %p54_p1 = scmp.lt.u32.totalorder %s50_s13, %s143_s1 }
   0x5   :  { %p56_p2 = pnand %p54_p1, %p51_p0 }
   0x7   :  { %59 = shalt.err (!%p56_p2)
}
   0x8   :  { %s60_s18 = scalar_lea.vmem %s19_s10, 256  ;;  %p65_p4 = scmp.lt.s32.totalorder %s19_s10, %s19_s10 }
   0x9   :  { %p61_p3 = scmp.ne.s32.totalorder %s19_s10, %s60_s18  ;;  %p66_p5 = scmp.lt.s32.totalorder %s60_s18, %s60_s18 }
   0xb   :  { %p67_p6 = por %p66_p5, %p65_p4 }
   0xd   :  { %p68_p7 = pnand %p67_p6, %p61_p3 }
   0xf   :  { %71 = shalt.err (!%p68_p7)
}
  0x10   :  { %21 = dma.hbm_to_vmem [thread:$0]  %s143_s1, 256, %s19_s10, [#allocation4]  }
  0x11   :  { %94 = dma.done.wait [#allocation4], 256  }
  0x12   :  { %95 = vsyncadd [#allocation4], 4294967040  ;;  %v28_v0 = vstv %s142_s0  ;;  %s99_s23 = smov [#allocation6]   ;;  %v26_v1 = vld [vmem:[#allocation3] sm:$0xff]  ;;  %v27_v2 = vld [vmem:[#allocation3 + $0x8] sm:$0xff] }
  0x13   :  { %s39_s24 = sshll.u32 %s99_s23, 4  ;;  %v29_v3 = vmul.f32 %v28_v0, %v26_v1  ;;  %v30_v4 = vmul.f32 %v28_v0, %v27_v2  ;;  %s40_s24 = int_to_ptr.vmem [resolvable:$true] %s39_s24 }
  0x14   :  { %s72_s25 = scalar_lea.vmem %s40_s24, 256  ;;  %p77_p9 = scmp.lt.s32.totalorder %s40_s24, %s40_s24 }
  0x15   :  { %31 = vst [vmem:[#allocation6] sm:$0xff] %v29_v3  ;;  %32 = vst [vmem:[#allocation6 + $0x8] sm:$0xff] %v30_v4  ;;  %p73_p8 = scmp.ne.s32.totalorder %s40_s24, %s72_s25  ;;  %p78_p10 = scmp.lt.s32.totalorder %s72_s25, %s72_s25 }
  0x17   :  { %p79_p11 = por %p78_p10, %p77_p9 }
  0x19   :  { %p80_p12 = pnand %p79_p11, %p73_p8 }
  0x1b   :  { %83 = shalt.err (!%p80_p12)
}
  0x1c   :  { %s84_s0 = scalar_lea.hbm %s144_s2, 256 }
  0x1d   :  { %p85_p13 = scmp.ne.s32.totalorder %s144_s2, %s84_s0  ;;  %p88_p0 = scmp.lt.u32.totalorder %s84_s0, %s144_s2 }
  0x1f   :  { %p90_p1 = pnand %p88_p0, %p85_p13 }
  0x21   :  { %93 = shalt.err (!%p90_p1)
}
  0x22   :  { %42 = dma.vmem_to_hbm [thread:$0]  %s40_s24, 256, %s144_s2, [#allocation5]  }
  0x23   :  { %96 = dma.done.wait [#allocation5], 256  }
  0x24   :  { %97 = vsyncadd [#allocation5], 4294967040 }
  0x25   :  { %46 = vsyncpa [#allocation4], 1 }
  0x26   :  { %47 = vsyncpa [#allocation5], 1 }

</bundles_post_ra>
